<compile_context>
chip_gen: v5e
topology: v5e:2x2
jax: 0.10.0
libtpu: 0.0.40
codegen_flags: <defaults>
</compile_context>

<pallas_src>
import jax
import jax.numpy as jnp
import numpy as np
from jax.experimental import pallas as pl
from jax.experimental.pallas import tpu as pltpu


# ---------------------------------------------------------------------------
# Fused kernel: 4 Linear layers, LeakyReLU(0.2) on the first three.
# ---------------------------------------------------------------------------
def _ae_encoder_kernel(x_ref, w1_ref, b1_ref, w2_ref, b2_ref,
                       w3_ref, b3_ref, wz_ref, bz_ref, out_ref):
    def leaky_relu(h):                       # f32 in, f32 out; slope 0.2 < 1
        return jnp.maximum(h, 0.2 * h)

    # Layer 1: cast the f32 x tile to bf16 on the VPU (free slack), MXU in
    # bf16 with f32 accumulation.
    h = jnp.dot(x_ref[...].astype(w1_ref.dtype), w1_ref[...],
                preferred_element_type=jnp.float32)
    h = leaky_relu(h + b1_ref[...])
    # Layer 2 (re-enter MXU in bf16 immediately so the f32 intermediate dies)
    h = jnp.dot(h.astype(w2_ref.dtype), w2_ref[...],
                preferred_element_type=jnp.float32)
    h = leaky_relu(h + b2_ref[...])
    # Layer 3
    h = jnp.dot(h.astype(w3_ref.dtype), w3_ref[...],
                preferred_element_type=jnp.float32)
    h = leaky_relu(h + b3_ref[...])
    # Final z_layer (no activation); output slab is lane-dense (padded cols
    # of Wz/bz are exactly zero, so discarded columns are 0+0).
    z = jnp.dot(h.astype(wz_ref.dtype), wz_ref[...],
                preferred_element_type=jnp.float32)
    out_ref[...] = (z + bz_ref[...]).astype(out_ref.dtype)


# ---------------------------------------------------------------------------
# One-time parameter preparation (hoisted out of the per-call path)
# ---------------------------------------------------------------------------
def prepare_encoder_params(params, compute_dtype=jnp.bfloat16):
    """params = ((w1,b1),(w2,b2),(w3,b3),(wz,bz)); w_l is (in_l, out_l).

    Returns a dict of bf16 weights, f32 row-vector biases, and the final
    layer zero-padded to a lane-dense (multiple-of-128) output width.
    """
    (w1, b1), (w2, b2), (w3, b3), (wz, bz) = params
    n_z = wz.shape[1]
    d_out = max(128, pl.cdiv(n_z, 128) * 128)

    wz_p = jnp.zeros((wz.shape[0], d_out), wz.dtype).at[:, :n_z].set(wz)
    bz_p = jnp.zeros((d_out,), jnp.float32).at[:n_z].set(bz.astype(jnp.float32))

    cast = lambda a: a.astype(compute_dtype)              # MXU operands -> bf16
    bias = lambda v: v.reshape(1, -1).astype(jnp.float32)  # biases stay f32

    return dict(
        w1=cast(w1), b1=bias(b1),
        w2=cast(w2), b2=bias(b2),
        w3=cast(w3), b3=bias(b3),
        wz=cast(wz_p), bz=bias(bz_p),
        n_z=n_z, d_out=d_out,
    )


def _choose_tm(m, tm):
    # Keep >= 2 grid steps when possible so both v7x TensorCores get work,
    # but never drop below 128 rows per tile (per-step overhead dominates).
    while tm > 128 and pl.cdiv(m, tm) < 2:
        tm //= 2
    return tm


# ---------------------------------------------------------------------------
# Wrapper (per-call path: one pallas_call + one column slice)
# ---------------------------------------------------------------------------
def ae_encoder_forward(x, prepped, *, tm=256, out_dtype=jnp.bfloat16):
    m, n_in = x.shape
    w1, b1 = prepped["w1"], prepped["b1"]
    w2, b2 = prepped["w2"], prepped["b2"]
    w3, b3 = prepped["w3"], prepped["b3"]
    wz, bz = prepped["wz"], prepped["bz"]
    n_z, d_out = prepped["n_z"], prepped["d_out"]
    d1, d2, d3 = w1.shape[1], w2.shape[1], w3.shape[1]

    tm = _choose_tm(m, tm)
    grid = (pl.cdiv(m, tm),)
    m_work = grid[0] * tm

    flops = 2 * m_work * (n_in * d1 + d1 * d2 + d2 * d3 + d3 * d_out)
    bytes_accessed = (
        x.size * x.dtype.itemsize                                   # f32 x in
        + sum(a.size * a.dtype.itemsize
              for a in (w1, w2, w3, wz, b1, b2, b3, bz))            # weights/biases
        + m * d_out * jnp.dtype(out_dtype).itemsize                 # bf16 out
    )

    full = lambda shape: pl.BlockSpec(shape, lambda i: (0, 0))

    out_padded = pl.pallas_call(
        _ae_encoder_kernel,
        out_shape=jax.ShapeDtypeStruct((m, d_out), out_dtype),
        grid=grid,
        in_specs=[
            pl.BlockSpec((tm, n_in), lambda i: (i, 0)),   # x row tile (f32)
            full(w1.shape), full(b1.shape),
            full(w2.shape), full(b2.shape),
            full(w3.shape), full(b3.shape),
            full(wz.shape), full(bz.shape),
        ],
        out_specs=pl.BlockSpec((tm, d_out), lambda i: (i, 0)),
        compiler_params=pltpu.CompilerParams(
            dimension_semantics=("parallel",)),
        cost_estimate=pl.CostEstimate(
            flops=flops, transcendentals=0, bytes_accessed=bytes_accessed),
    )(x, w1, b1, w2, b2, w3, b3, wz, bz)

    return out_padded[:, :n_z]


# ---------------------------------------------------------------------------
# Pure-JAX reference with the SAME precision policy (bf16 operands, f32 acc)
# ---------------------------------------------------------------------------
def reference_forward(x, params, compute_dtype=jnp.bfloat16):
    (w1, b1), (w2, b2), (w3, b3), (wz, bz) = params

    def lin(h, w, b):
        return (jnp.dot(h.astype(compute_dtype), w.astype(compute_dtype),
                        preferred_element_type=jnp.float32)
                + b.astype(jnp.float32).reshape(1, -1))

    def lrelu(h):
        return jnp.maximum(h, 0.2 * h)

    h = lrelu(lin(x, w1, b1))
    h = lrelu(lin(h, w2, b2))
    h = lrelu(lin(h, w3, b3))
    return lin(h, wz, bz)


# ---------------------------------------------------------------------------
# Deterministic parameter init (Xavier-uniform weights, Linear-style biases)
# ---------------------------------------------------------------------------
def make_linear(key, fan_in, fan_out):
    kw, kb = jax.random.split(key)
    a = float(np.sqrt(6.0 / (fan_in + fan_out)))
    w = jax.random.uniform(kw, (fan_in, fan_out), jnp.float32, -a, a)
    bb = float(1.0 / np.sqrt(fan_in))
    b = jax.random.uniform(kb, (fan_out,), jnp.float32, -bb, bb)
    return w, b


if __name__ == "__main__":
    # Small shapes consistent with the module:
    #   N nodes = 256, n_input = 128, ae_n_enc_{1,2,3} = 128, 256, 128, n_z = 20
    N, n_input = 256, 128
    ae_n_enc_1, ae_n_enc_2, ae_n_enc_3, n_z = 128, 256, 128, 20

    key = jax.random.PRNGKey(0)
    kx, k1, k2, k3, kz = jax.random.split(key, 5)

    x = jax.random.normal(kx, (N, n_input), dtype=jnp.float32)
    params = (
        make_linear(k1, n_input, ae_n_enc_1),
        make_linear(k2, ae_n_enc_1, ae_n_enc_2),
        make_linear(k3, ae_n_enc_2, ae_n_enc_3),
        make_linear(kz, ae_n_enc_3, n_z),
    )

    # One-time parameter prep (bf16 casts + lane-dense padding of Wz/bz).
    prepped = prepare_encoder_params(params)

    z_ae = jax.block_until_ready(ae_encoder_forward(x, prepped))

    # Correctness check against a matched-precision reference (bf16 MXU
    # operands, f32 accumulation); tolerance covers the bf16 output store.
    z_ref = reference_forward(x, params)
    np.testing.assert_allclose(np.asarray(z_ae, dtype=np.float32),
                               np.asarray(z_ref, dtype=np.float32),
                               rtol=2e-2, atol=2e-2)

    print("KERNEL_OK")
</pallas_src>

<mosaic_0001>
module attributes {stable_mosaic.version = 11 : i64} {
  func.func @_ae_encoder_kernel(%arg0: i32, %arg1: memref<128x128xf32, #tpu.memory_space<vmem>>, %arg2: memref<128x128xbf16, #tpu.memory_space<vmem>>, %arg3: memref<1x128xf32, #tpu.memory_space<vmem>>, %arg4: memref<128x256xbf16, #tpu.memory_space<vmem>>, %arg5: memref<1x256xf32, #tpu.memory_space<vmem>>, %arg6: memref<256x128xbf16, #tpu.memory_space<vmem>>, %arg7: memref<1x128xf32, #tpu.memory_space<vmem>>, %arg8: memref<128x128xbf16, #tpu.memory_space<vmem>>, %arg9: memref<1x128xf32, #tpu.memory_space<vmem>>, %arg10: memref<128x128xbf16, #tpu.memory_space<vmem>>) attributes {dimension_semantics = [#tpu.dimension_semantics<parallel>], iteration_bounds = array<i64: 2>, scalar_prefetch = 0 : i64, scratch_operands = 0 : i64, tpu.core_type = #tpu.core_type<tc>, window_params = [{transform_indices = @transform_0, window_bounds = array<i64: 128, 128>}, {pipeline_mode = #tpu.pipeline_mode<synchronous>, transform_indices = @transform_1, window_bounds = array<i64: 128, 128>}, {pipeline_mode = #tpu.pipeline_mode<synchronous>, transform_indices = @transform_2, window_bounds = array<i64: 1, 128>}, {pipeline_mode = #tpu.pipeline_mode<synchronous>, transform_indices = @transform_3, window_bounds = array<i64: 128, 256>}, {pipeline_mode = #tpu.pipeline_mode<synchronous>, transform_indices = @transform_4, window_bounds = array<i64: 1, 256>}, {pipeline_mode = #tpu.pipeline_mode<synchronous>, transform_indices = @transform_5, window_bounds = array<i64: 256, 128>}, {pipeline_mode = #tpu.pipeline_mode<synchronous>, transform_indices = @transform_6, window_bounds = array<i64: 1, 128>}, {pipeline_mode = #tpu.pipeline_mode<synchronous>, transform_indices = @transform_7, window_bounds = array<i64: 128, 128>}, {pipeline_mode = #tpu.pipeline_mode<synchronous>, transform_indices = @transform_8, window_bounds = array<i64: 1, 128>}, {transform_indices = @transform_9, window_bounds = array<i64: 128, 128>}]} {
    %c0 = arith.constant 0 : index
    %c0_0 = arith.constant 0 : index
    %0 = vector.load %arg1[%c0, %c0_0] : memref<128x128xf32, #tpu.memory_space<vmem>>, vector<128x128xf32>
    %1 = arith.truncf %0 : vector<128x128xf32> to vector<128x128xbf16>
    %c0_1 = arith.constant 0 : index
    %c0_2 = arith.constant 0 : index
    %2 = vector.load %arg2[%c0_1, %c0_2] : memref<128x128xbf16, #tpu.memory_space<vmem>>, vector<128x128xbf16>
    %cst = arith.constant dense<0.000000e+00> : vector<128x128xf32>
    %3 = tpu.matmul %1, %2, %cst {dimension_numbers = #tpu.dot_dimension_numbers<[1], [0], [0], [1], [0, 0, 1, 1], [], []>} : vector<128x128xbf16>, vector<128x128xbf16>, vector<128x128xf32> -> vector<128x128xf32>
    %c0_3 = arith.constant 0 : index
    %c0_4 = arith.constant 0 : index
    %4 = vector.load %arg3[%c0_3, %c0_4] : memref<1x128xf32, #tpu.memory_space<vmem>>, vector<1x128xf32>
    %5 = vector.broadcast %4 : vector<1x128xf32> to vector<128x128xf32>
    %6 = arith.addf %3, %5 : vector<128x128xf32>
    %cst_5 = arith.constant 2.000000e-01 : f32
    %7 = vector.broadcast %cst_5 : f32 to vector<128x128xf32>
    %8 = arith.mulf %7, %6 : vector<128x128xf32>
    %9 = arith.maximumf %6, %8 : vector<128x128xf32>
    %10 = arith.truncf %9 : vector<128x128xf32> to vector<128x128xbf16>
    %c0_6 = arith.constant 0 : index
    %c0_7 = arith.constant 0 : index
    %11 = vector.load %arg4[%c0_6, %c0_7] : memref<128x256xbf16, #tpu.memory_space<vmem>>, vector<128x256xbf16>
    %cst_8 = arith.constant dense<0.000000e+00> : vector<128x256xf32>
    %12 = tpu.matmul %10, %11, %cst_8 {dimension_numbers = #tpu.dot_dimension_numbers<[1], [0], [0], [1], [0, 0, 1, 1], [], []>} : vector<128x128xbf16>, vector<128x256xbf16>, vector<128x256xf32> -> vector<128x256xf32>
    %c0_9 = arith.constant 0 : index
    %c0_10 = arith.constant 0 : index
    %13 = vector.load %arg5[%c0_9, %c0_10] : memref<1x256xf32, #tpu.memory_space<vmem>>, vector<1x256xf32>
    %14 = vector.broadcast %13 : vector<1x256xf32> to vector<128x256xf32>
    %15 = arith.addf %12, %14 : vector<128x256xf32>
    %cst_11 = arith.constant 2.000000e-01 : f32
    %16 = vector.broadcast %cst_11 : f32 to vector<128x256xf32>
    %17 = arith.mulf %16, %15 : vector<128x256xf32>
    %18 = arith.maximumf %15, %17 : vector<128x256xf32>
    %19 = arith.truncf %18 : vector<128x256xf32> to vector<128x256xbf16>
    %c0_12 = arith.constant 0 : index
    %c0_13 = arith.constant 0 : index
    %20 = vector.load %arg6[%c0_12, %c0_13] : memref<256x128xbf16, #tpu.memory_space<vmem>>, vector<256x128xbf16>
    %cst_14 = arith.constant dense<0.000000e+00> : vector<128x128xf32>
    %21 = tpu.matmul %19, %20, %cst_14 {dimension_numbers = #tpu.dot_dimension_numbers<[1], [0], [0], [1], [0, 0, 1, 1], [], []>} : vector<128x256xbf16>, vector<256x128xbf16>, vector<128x128xf32> -> vector<128x128xf32>
    %c0_15 = arith.constant 0 : index
    %c0_16 = arith.constant 0 : index
    %22 = vector.load %arg7[%c0_15, %c0_16] : memref<1x128xf32, #tpu.memory_space<vmem>>, vector<1x128xf32>
    %23 = vector.broadcast %22 : vector<1x128xf32> to vector<128x128xf32>
    %24 = arith.addf %21, %23 : vector<128x128xf32>
    %cst_17 = arith.constant 2.000000e-01 : f32
    %25 = vector.broadcast %cst_17 : f32 to vector<128x128xf32>
    %26 = arith.mulf %25, %24 : vector<128x128xf32>
    %27 = arith.maximumf %24, %26 : vector<128x128xf32>
    %28 = arith.truncf %27 : vector<128x128xf32> to vector<128x128xbf16>
    %c0_18 = arith.constant 0 : index
    %c0_19 = arith.constant 0 : index
    %29 = vector.load %arg8[%c0_18, %c0_19] : memref<128x128xbf16, #tpu.memory_space<vmem>>, vector<128x128xbf16>
    %cst_20 = arith.constant dense<0.000000e+00> : vector<128x128xf32>
    %30 = tpu.matmul %28, %29, %cst_20 {dimension_numbers = #tpu.dot_dimension_numbers<[1], [0], [0], [1], [0, 0, 1, 1], [], []>} : vector<128x128xbf16>, vector<128x128xbf16>, vector<128x128xf32> -> vector<128x128xf32>
    %c0_21 = arith.constant 0 : index
    %c0_22 = arith.constant 0 : index
    %31 = vector.load %arg9[%c0_21, %c0_22] : memref<1x128xf32, #tpu.memory_space<vmem>>, vector<1x128xf32>
    %32 = vector.broadcast %31 : vector<1x128xf32> to vector<128x128xf32>
    %33 = arith.addf %30, %32 : vector<128x128xf32>
    %34 = arith.truncf %33 : vector<128x128xf32> to vector<128x128xbf16>
    %c0_23 = arith.constant 0 : index
    %c0_24 = arith.constant 0 : index
    %35 = vector.load %arg10[%c0_23, %c0_24] : memref<128x128xbf16, #tpu.memory_space<vmem>>, vector<128x128xbf16>
    tpu.vector_store %arg10[%c0_23, %c0_24], %34 {strides = array<i32>} : memref<128x128xbf16, #tpu.memory_space<vmem>>, vector<128x128xbf16>,
    return
  }
  func.func @transform_0(%arg0: i32) -> (i32, i32) {
    %c0_i32 = arith.constant 0 : i32
    %c0_i32_0 = arith.constant 0 : i32
    return %arg0, %c0_i32 : i32, i32
  }
  func.func @transform_1(%arg0: i32) -> (i32, i32) {
    %c0_i32 = arith.constant 0 : i32
    %c0_i32_0 = arith.constant 0 : i32
    %c0_i32_1 = arith.constant 0 : i32
    return %c0_i32, %c0_i32_0 : i32, i32
  }
  func.func @transform_2(%arg0: i32) -> (i32, i32) {
    %c0_i32 = arith.constant 0 : i32
    %c0_i32_0 = arith.constant 0 : i32
    %c0_i32_1 = arith.constant 0 : i32
    return %c0_i32, %c0_i32_0 : i32, i32
  }
  func.func @transform_3(%arg0: i32) -> (i32, i32) {
    %c0_i32 = arith.constant 0 : i32
    %c0_i32_0 = arith.constant 0 : i32
    %c0_i32_1 = arith.constant 0 : i32
    return %c0_i32, %c0_i32_0 : i32, i32
  }
  func.func @transform_4(%arg0: i32) -> (i32, i32) {
    %c0_i32 = arith.constant 0 : i32
    %c0_i32_0 = arith.constant 0 : i32
    %c0_i32_1 = arith.constant 0 : i32
    return %c0_i32, %c0_i32_0 : i32, i32
  }
  func.func @transform_5(%arg0: i32) -> (i32, i32) {
    %c0_i32 = arith.constant 0 : i32
    %c0_i32_0 = arith.constant 0 : i32
    %c0_i32_1 = arith.constant 0 : i32
    return %c0_i32, %c0_i32_0 : i32, i32
  }
  func.func @transform_6(%arg0: i32) -> (i32, i32) {
    %c0_i32 = arith.constant 0 : i32
    %c0_i32_0 = arith.constant 0 : i32
    %c0_i32_1 = arith.constant 0 : i32
    return %c0_i32, %c0_i32_0 : i32, i32
  }
  func.func @transform_7(%arg0: i32) -> (i32, i32) {
    %c0_i32 = arith.constant 0 : i32
    %c0_i32_0 = arith.constant 0 : i32
    %c0_i32_1 = arith.constant 0 : i32
    return %c0_i32, %c0_i32_0 : i32, i32
  }
  func.func @transform_8(%arg0: i32) -> (i32, i32) {
    %c0_i32 = arith.constant 0 : i32
    %c0_i32_0 = arith.constant 0 : i32
    %c0_i32_1 = arith.constant 0 : i32
    return %c0_i32, %c0_i32_0 : i32, i32
  }
  func.func @transform_9(%arg0: i32) -> (i32, i32) {
    %c0_i32 = arith.constant 0 : i32
    %c0_i32_0 = arith.constant 0 : i32
    return %arg0, %c0_i32 : i32, i32
  }
}

</mosaic_0001>

<bundles_post_ra>
// kernel: tpu_custom_call.1
= control target key start
LH: loop header
LB: loop body
LE: loop exit
PB: predicated region body
PF: predicated region fallthrough
CT: control target
= control target key end

     0   :  { %s2424_s0 = inlined_call_operand.hbm [shape: f32[256,128], index: 0, kind: input, shape index: {}]   ;;  %s2425_s1 = inlined_call_operand.hbm [shape: bf16[128,128], index: 1, kind: input, shape index: {}]   ;;  %s2426_s2 = inlined_call_operand.vmem [shape: f32[1,128], index: 2, kind: input, shape index: {}]   ;;  %s2427_s3 = inlined_call_operand.hbm [shape: bf16[128,256], index: 3, kind: input, shape index: {}]   ;;  %s2428_s4 = inlined_call_operand.vmem [shape: f32[1,256], index: 4, kind: input, shape index: {}]   ;;  %s2429_s5 = inlined_call_operand.hbm [shape: bf16[256,128], index: 5, kind: input, shape index: {}]   ;;  %s2430_s6 = inlined_call_operand.vmem [shape: f32[1,128], index: 6, kind: input, shape index: {}]   ;;  %s2431_s7 = inlined_call_operand.hbm [shape: bf16[128,128], index: 7, kind: input, shape index: {}]   ;;  %s2432_s8 = inlined_call_operand.vmem [shape: f32[1,128], index: 8, kind: input, shape index: {}]   ;;  %s2433_s9 = inlined_call_operand.hbm [shape: bf16[256,128], index: 9, kind: output, shape index: {}]  }
   0x1   :  { %2436 = sst [smem:[#allocation16_spill]] %s2425_s1 }
   0x2   :  { %2437 = sst [smem:[#allocation17_spill]] %s2427_s3 }
   0x3   :  { %2438 = sst [smem:[#allocation18_spill]] %s2429_s5 }
   0x4   :  { %14 = vsyncpa [#allocation3], 0 }
   0x5   :  { %16 = vsyncpa [#allocation3 + $0x1], 0 }
   0x6   :  { %17 = vsyncpa [#allocation6], 0 }
   0x7   :  { %18 = vsyncpa [#allocation9], 0 }
   0x8   :  { %19 = vsyncpa [#allocation4], 0 }
   0x9   :  { %21 = vsyncpa [#allocation4 + $0x1], 0  ;;  %s2137_s30 = smov 0   ;;  %s2139_s10 = smov 0  }
   0xa   :  { %s2141_s11 = smov 0   ;;  %s2143_s12 = smov 0  }
   0xb LB: > { %s2158_s13 = sadd.s32 4294967295, %s2075_s12   ;;  %s1428_s14 = sadd.s32 4294967294, %s2075_s12   ;;  %s2075_s12 = sphi %s2143_s12, %s2454_s12   ;;  %s2071_s11 = sphi %s2141_s11, %s2453_s11   ;;  %s2067_s10 = sphi %s2139_s10, %s2452_s10   ;;  %s2063_s30 = sphi %s2137_s30, %s2451_s30  }
   0xc   : > { %p47_p0 = scmp.ne.s32.totalorder %s2067_s10, %s2063_s30  ;;  %p48_p1 = scmp.eq.s32.totalorder %s2158_s13, 0 }
   0xd   : > { %p239_p2 = scmp.eq.s32.totalorder %s2158_s13, 1  ;;  %p245_p3 = scmp.eq.s32.totalorder %s1428_s14, 1 }
   0xe   : > { %p2167_p4 = por %p48_p1, %p47_p0  ;;  %p1429_p5 = scmp.ge.s32.totalorder %s2075_s12, 1 }
   0xf   : > { %p2172_p6 = por %p245_p3, %p47_p0  ;;  %p252_p7 = scmp.lt.s32.totalorder %s2075_s12, 3 }
  0x10   : > { %s2441_s1 = sld [smem:[#allocation16_spill]]  ;;  %s2077_s21 = smov [#allocation5]  }
  0x11   : > { %p2180_p8 = pnand %p1429_p5, %p252_p7  ;;  %s265_s22 = sshll.u32 %s2077_s21, 4  ;;  %s266_s22 = int_to_ptr.vmem [resolvable:$true] %s265_s22 }
  0x12   : > { %s2444_s5 = sld [smem:[#allocation18_spill]]  ;;  %s2078_s27 = smov 64  }
  0x13   : > { %p1775_p9 = pneg %p2180_p8  ;;  %s2079_s28 = smov 4  }
  0x14   : > { %s2080_s29 = smov [#allocation8]   ;;  %s2445_s3 = sld [smem:[#allocation17_spill]] }
  0x15   : > { %p2188_p10 = pnand %p1775_p9, %p48_p1  ;;  %s299_s14 = sshll.u32 %s2080_s29, 4  ;;  %s300_s14 = int_to_ptr.vmem [resolvable:$true] %s299_s14 }
  0x16   : > { %s263_s19 = sshll.u32 %s2441_s1, 4  ;;  %s2081_s24 = smov [#allocation7]   ;;  %s264_s19 = int_to_ptr.hbm [resolvable:$true] %s263_s19 }
  0x17   : > { %1778 = dma.hbm_to_vmem [thread:$0]  (!%p2188_p10), %s264_s19, 1024, %s266_s22, [#allocation6], %s2078_s27, %s2078_s27, %s2079_s28  }
  0x18   : > { %s297_s26 = sshll.u32 %s2444_s5, 4  ;;  %s282_s25 = sshll.u32 %s2081_s24, 4  ;;  %s298_s26 = int_to_ptr.hbm [resolvable:$true] %s297_s26  ;;  %s283_s25 = int_to_ptr.vmem [resolvable:$true] %s282_s25 }
  0x19   : > { %1784 = dma.hbm_to_vmem [thread:$0]  (!%p2188_p10), %s298_s26, 2048, %s300_s14, [#allocation9], %s2078_s27, %s2078_s27, %s2079_s28  }
  0x1a   : > { %s280_s21 = sshll.u32 %s2445_s3, 4  ;;  %s314_s29 = sshll.u32 %s2431_s7, 4  ;;  %s281_s21 = int_to_ptr.hbm [resolvable:$true] %s280_s21  ;;  %s315_s29 = int_to_ptr.hbm [resolvable:$true] %s314_s29 }
  0x1b   : > { %s2434_s17 = smov 128   ;;  %s2435_s18 = smov 8  }
  0x1c   : > { %1781 = dma.hbm_to_vmem [thread:$0]  (!%p2188_p10), %s281_s21, 2048, %s283_s25, [#allocation6], %s2434_s17, %s2434_s17, %s2435_s18  }
  0x1d   : > { %s2084_s26 = smov [#allocation10]   ;;  %s2214_s24 = sadd.s32 1, %s2075_s12  }
  0x1e   : > { %s316_s14 = sshll.u32 %s2084_s26, 4  ;;  %s34_s19 = sadd.s32 1, %s2071_s11  ;;  %s317_s14 = int_to_ptr.vmem [resolvable:$true] %s316_s14 }
  0x1f   : > { %1787 = dma.hbm_to_vmem [thread:$0]  (!%p2188_p10), %s315_s29, 1024, %s317_s14, [#allocation9], %s2078_s27, %s2078_s27, %s2079_s28  }
  0x20   : > { %s31_s22 = ssub.s32 %s2075_s12, %s2214_s24  ;;  %p41_p12 = scmp.ne.s32.totalorder %s2071_s11, %s2067_s10 }
  0x21   : > { %p32_p13 = scmp.eq.s32.totalorder %s31_s22, 0  ;;  %p42_p0 = scmp.eq.s32.totalorder %s2075_s12, 0 }
  0x22   : > { %p2224_p3 = por %p239_p2, %p41_p12  ;;  %p1800_p5 = scmp.lt.s32.totalorder %s2075_s12, 2 }
  0x23   : > { %s2230_s21 = scalar_select %p32_p13, %s2071_s11, %s34_s19  }
  0x24   : > { %p43_p7 = por %p42_p0, %p41_p12  ;;  %s333_s25 = sand.u32 1, %s2071_s11  }
  0x25   : > { %s1435_s23 = sshll.u32 %s333_s25, 7  ;;  %s1642_s27 = sshll.u32 %s2075_s12, 7 }
  0x26   : > { %s342_s26 = scalar_lea.hbm %s2424_s0, %s1642_s27  ;;  %s337_s14 = scalar_lea.vmem [#allocation2], %s1435_s23 }
  0x27   : > { %s345_s17 = sshll.u32 %s337_s14, 4  ;;  %s343_s22 = sshll.u32 %s342_s26, 4  ;;  %s346_s17 = int_to_ptr.vmem [resolvable:$true] %s345_s17  ;;  %s344_s22 = int_to_ptr.hbm [resolvable:$true] %s343_s22 }
  0x28   : > { %p2237_p2 = pnand %p1800_p5, %p43_p7  ;;  %s334_s19 = scalar_lea.sflag [#allocation3], %s333_s25 }
  0x29   : > { %s1971_s3 = sshra.s32 %s344_s22, 4  ;;  %s1978_s28 = scalar_lea.hbm %s2424_s0, 256  ;;  %s1972_s3 = int_to_ptr.hbm [resolvable:$true] %s1971_s3 }
  0x2a   : > { %s1973_s5 = scalar_lea.hbm %s1972_s3, 128  ;;  %p1975_p10 = pneg %p2237_p2 }
  0x2b   : > { %p1974_p9 = scmp.ne.s32.totalorder %s1972_s3, %s1973_s5  ;;  %p1979_p0 = scmp.lt.s32.totalorder %s1972_s3, %s2424_s0 }
  0x2c   : > { %p1980_p5 = scmp.lt.s32.totalorder %s1978_s28, %s1973_s5 }
  0x2d   : > { %p1976_p12 = pnand %p1975_p10, %p1974_p9 }
  0x2e   : > { %p1981_p7 = por %p1980_p5, %p1979_p0 }
  0x2f   : > { %p1977_p13 = pneg %p1976_p12 }
  0x31   : > { %p1982_p11 = pnand %p1981_p7, %p1977_p13 }
  0x33   : > { %1985 = shalt.err (!%p1982_p11)
}
  0x34   : > { %s2448_s25 = smov 8   ;;  %s2449_s14 = smov 128  }
  0x35   : > { %1791 = dma.hbm_to_vmem [thread:$0]  (!%p2237_p2), %s344_s22, 2048, %s346_s17, %s334_s19, %s2449_s14, %s2449_s14, %s2448_s25  }
  0x36   : > { %357 = sbr.rel (%p2180_p8) target bundleno = 784 (0x310), region = 56  ;;  %s2257_s27 = sand.u32 (!%p2180_p8), 1, %s2067_s10  }
  0x37   : > { %s1439_s3 = sshll.u32 (!%p2180_p8), %s2257_s27, 7  ;;  %s360_s5 = scalar_lea.sflag (!%p2180_p8), [#allocation3], %s2257_s27 }
  0x38   : > { %s2261_s23 = scalar_lea.vmem (!%p2180_p8), [#allocation2], %s1439_s3 }
  0x3b   : > { %2046 = dma.done.wait (%p2167_p4), %s360_s5, 2048  }
  0x3c   : > { %2048 = vsyncadd (%p2167_p4), %s360_s5, 4294965248 }
  0x3d   : > { %2050 = dma.done.wait (%p48_p1), [#allocation6], 3072  }
  0x3e   : > { %2052 = vsyncadd (%p48_p1), [#allocation6], 4294964224 }
  0x3f   : > { %2054 = dma.done.wait (%p48_p1), [#allocation9], 3072  }
  0x40   : > { %2056 = vsyncadd (%p48_p1), [#allocation9], 4294964224  ;;  %v1650_v0 = vld [vmem:[#allocation5 + $0x38] sm:$0xff]  ;;  %v1649_v1 = vld [vmem:[#allocation5 + $0x30] sm:$0xff]  ;;  %s1444_s26 = sshll.u32 %s2257_s27, 6  ;;  %s1691_s14 = sshll.u32 %s2158_s13, 6 }
  0x41   : > { %513 = vmatpush.bf16.msra.mxu0 %v1650_v0  ;;  %1739 = vmatpush.bf16.msra.mxu2 %v1650_v0  ;;  %v1648_v2 = vld [vmem:[#allocation5 + $0x28] sm:$0xff]  ;;  %v1647_v3 = vld [vmem:[#allocation5 + $0x20] sm:$0xff]  ;;  %v1646_v4 = vld [vmem:[#allocation5 + $0x18] sm:$0xff]  ;;  %s2380_s25 = scalar_lea.vmem [#allocation11], %s1444_s26  ;;  %s1302_s17 = scalar_lea.sflag [#allocation4], %s2257_s27 }
  0x42   : > { %v1645_v5 = vld [vmem:[#allocation5 + $0x10] sm:$0xff]  ;;  %v1644_v6 = vld [vmem:[#allocation5 + $0x8] sm:$0xff]  ;;  %v1643_v7 = vld [vmem:[#allocation5] sm:$0xff]  ;;  %s1314_s15 = sshll.u32 %s2380_s25, 4  ;;  %s2021_s28 = scalar_lea.hbm %s2433_s9, 128  ;;  %s1315_s15 = int_to_ptr.vmem [resolvable:$true] %s1314_s15 }
  0x43   : > { %v421_v8 = vld [vmem:[%s2261_s23] sm:$0xff]  ;;  %v422_v9 = vld [vmem:[%s2261_s23 + $0x8] sm:$0xff]  ;;  %v423_v14 = vld [vmem:[%s2261_s23 + $0x10] sm:$0xff] }
  0x44   : > { %v437_v10 = vpack.c.bf16 %v422_v9, %v421_v8  ;;  %v429_v11 = vld [vmem:[%s2261_s23 + $0x40] sm:$0xff]  ;;  %v430_v12 = vld [vmem:[%s2261_s23 + $0x48] sm:$0xff]  ;;  %v424_v15 = vld [vmem:[%s2261_s23 + $0x18] sm:$0xff] }
  0x45   : > { %514 = vmatpush.bf16.msra.mxu0 %v1649_v1  ;;  %1740 = vmatpush.bf16.msra.mxu2 %v1649_v1  ;;  %v441_v13 = vpack.c.bf16 %v430_v12, %v429_v11  ;;  %v438_v16 = vpack.c.bf16 %v424_v15, %v423_v14  ;;  %v431_v17 = vld [vmem:[%s2261_s23 + $0x50] sm:$0xff]  ;;  %v432_v18 = vld [vmem:[%s2261_s23 + $0x58] sm:$0xff]  ;;  %v1663_v23 = vld [vmem:[#allocation7 + $0x64] sm:$0xf] }
  0x46   : > { %v442_v19 = vpack.c.bf16 %v432_v18, %v431_v17  ;;  %v1665_v20 = vld [vmem:[#allocation7 + $0x74] sm:$0xf]  ;;  %v1537_v21 = vld [vmem:[#allocation7 + $0x78] sm:$0xf0]  ;;  %v1529_v24 = vld [vmem:[#allocation7 + $0x68] sm:$0xf0] }
  0x47   : > { %v1540_v22 = vor.u32 %v1665_v20, %v1537_v21  ;;  %v1532_v25 = vor.u32 %v1663_v23, %v1529_v24  ;;  %v1661_v26 = vld [vmem:[#allocation7 + $0x54] sm:$0xf]  ;;  %v1535_v27 = vld [vmem:[#allocation7 + $0x70] sm:$0xf]  ;;  %v1666_v28 = vld [vmem:[#allocation7 + $0x74] sm:$0xf0] }
  0x48   : > { %v1521_v29 = vld [vmem:[#allocation7 + $0x58] sm:$0xf0]  ;;  %v1536_v30 = vor.u32 %v1666_v28, %v1535_v27  ;;  %v1527_v31 = vld [vmem:[#allocation7 + $0x60] sm:$0xf]  ;;  %v1664_v32 = vld [vmem:[#allocation7 + $0x64] sm:$0xf0] }
  0x49   : > { %515 = vmatpush.bf16.msra.mxu0 %v1648_v2  ;;  %1741 = vmatpush.bf16.msra.mxu2 %v1648_v2  ;;  %v1528_v33 = vor.u32 %v1664_v32, %v1527_v31  ;;  %v425_v34 = vld [vmem:[%s2261_s23 + $0x20] sm:$0xff]  ;;  %v1524_v35 = vor.u32 %v1661_v26, %v1521_v29  ;;  %v1519_v36 = vld [vmem:[#allocation7 + $0x50] sm:$0xf]  ;;  %v1662_v37 = vld [vmem:[#allocation7 + $0x54] sm:$0xf0] }
  0x4a   : > { %704 = vmatpush.bf16.msra.mxu1 %v1536_v30  ;;  %1747 = vmatpush.bf16.msra.mxu3 %v1536_v30  ;;  %v426_v38 = vld [vmem:[%s2261_s23 + $0x28] sm:$0xff]  ;;  %v433_v39 = vld [vmem:[%s2261_s23 + $0x60] sm:$0xff]  ;;  %v1520_v43 = vor.u32 %v1662_v37, %v1519_v36  ;;  %v1657_v49 = vld [vmem:[#allocation7 + $0x34] sm:$0xf] }
  0x4b   : > { %v434_v40 = vld [vmem:[%s2261_s23 + $0x68] sm:$0xff]  ;;  %v1659_v41 = vld [vmem:[#allocation7 + $0x44] sm:$0xf]  ;;  %v439_v44 = vpack.c.bf16 %v426_v38, %v425_v34  ;;  %v1511_v46 = vld [vmem:[#allocation7 + $0x40] sm:$0xf] }
  0x4c   : > { %v1513_v42 = vld [vmem:[#allocation7 + $0x48] sm:$0xf0]  ;;  %v443_v45 = vpack.c.bf16 %v434_v40, %v433_v39  ;;  %v1660_v47 = vld [vmem:[#allocation7 + $0x44] sm:$0xf0]  ;;  %v1505_v50 = vld [vmem:[#allocation7 + $0x38] sm:$0xf0] }
  0x4d   : > { %516 = vmatpush.bf16.msra.mxu0 %v1647_v3  ;;  %1742 = vmatpush.bf16.msra.mxu2 %v1647_v3  ;;  %v1516_v48 = vor.u32 %v1659_v41, %v1513_v42  ;;  %v1512_v51 = vor.u32 %v1660_v47, %v1511_v46  ;;  %v1508_v52 = vor.u32 %v1657_v49, %v1505_v50  ;;  %v1655_v53 = vld [vmem:[#allocation7 + $0x24] sm:$0xf]  ;;  %v1497_v54 = vld [vmem:[#allocation7 + $0x28] sm:$0xf0]  ;;  %v427_v56 = vld [vmem:[%s2261_s23 + $0x30] sm:$0xff] }
  0x4e   : > { %705 = vmatpush.bf16.msra.mxu1 %v1528_v33  ;;  %1748 = vmatpush.bf16.msra.mxu3 %v1528_v33  ;;  %v1500_v55 = vor.u32 %v1655_v53, %v1497_v54  ;;  %v428_v57 = vld [vmem:[%s2261_s23 + $0x38] sm:$0xff]  ;;  %v435_v58 = vld [vmem:[%s2261_s23 + $0x70] sm:$0xff]  ;;  %v1495_v1 = vld [vmem:[#allocation7 + $0x20] sm:$0xf] }
  0x4f   : > { %v436_v59 = vld [vmem:[%s2261_s23 + $0x78] sm:$0xff]  ;;  %v440_v60 = vpack.c.bf16 %v428_v57, %v427_v56  ;;  %v1503_v62 = vld [vmem:[#allocation7 + $0x30] sm:$0xf]  ;;  %v1656_v2 = vld [vmem:[#allocation7 + $0x24] sm:$0xf0]  ;;  %s1313_s23 = scalar_lea.hbm %s2433_s9, %s1691_s14 }
  0x50   : > { %v444_v61 = vpack.c.bf16 %v436_v59, %v435_v58  ;;  %v1658_v63 = vld [vmem:[#allocation7 + $0x34] sm:$0xf0]  ;;  %v1496_v3 = vor.u32 %v1656_v2, %v1495_v1  ;;  %v1481_v11 = vld [vmem:[#allocation7 + $0x8] sm:$0xf0]  ;;  %v1479_v12 = vld [vmem:[#allocation7] sm:$0xf] }
  0x51   : > { %517 = vmatpush.bf16.msra.mxu0 %v1646_v4  ;;  %1743 = vmatpush.bf16.msra.mxu2 %v1646_v4  ;;  %v1504_v0 = vor.u32 %v1658_v63, %v1503_v62  ;;  %v1653_v4 = vld [vmem:[#allocation7 + $0x14] sm:$0xf]  ;;  %v1654_v8 = vld [vmem:[#allocation7 + $0x14] sm:$0xf0]  ;;  %v1652_v14 = vld [vmem:[#allocation7 + $0x4] sm:$0xf0] }
  0x52   : > { %706 = vmatpush.bf16.msra.mxu1 %v1520_v43  ;;  %1749 = vmatpush.bf16.msra.mxu3 %v1520_v43  ;;  %v1480_v15 = vor.u32 %v1652_v14, %v1479_v12  ;;  %v2294_v17 = vld [vmem:[%s2426_s2] ss:$0 sm:$0xff]  ;;  %s1316_s20 = sshll.u32 %s1313_s23, 4  ;;  %s1317_s20 = int_to_ptr.hbm [resolvable:$true] %s1316_s20 }
  0x53   : > { %s2015_s18 = sshra.s32 %s1317_s20, 4  ;;  %s2016_s18 = int_to_ptr.hbm [resolvable:$true] %s2015_s18 }
  0x54   : > { %s2017_s22 = scalar_lea.hbm %s2016_s18, 64  ;;  %p2022_p11 = scmp.lt.s32.totalorder %s2016_s18, %s2433_s9 }
  0x55   : > { %518 = vmatpush.bf16.msra.mxu0 %v1645_v5  ;;  %1744 = vmatpush.bf16.msra.mxu2 %v1645_v5  ;;  %v1489_v5 = vld [vmem:[#allocation7 + $0x18] sm:$0xf0]  ;;  %p2018_p1 = scmp.ne.s32.totalorder %s2016_s18, %s2017_s22  ;;  %p2023_p2 = scmp.lt.s32.totalorder %s2021_s28, %s2017_s22 }
  0x56   : > { %707 = vmatpush.bf16.msra.mxu1 %v1512_v51  ;;  %1750 = vmatpush.bf16.msra.mxu3 %v1512_v51 }
  0x57   : > { %p2019_p4 = pnand %p2018_p1, %p2224_p3  ;;  %p2024_p9 = por %p2023_p2, %p2022_p11 }
  0x59   : > { %519 = vmatpush.bf16.msra.mxu0 %v1644_v6  ;;  %1745 = vmatpush.bf16.msra.mxu2 %v1644_v6  ;;  %v1492_v6 = vor.u32 %v1653_v4, %v1489_v5  ;;  %p2020_p8 = pneg %p2019_p4 }
  0x5a   : > { %708 = vmatpush.bf16.msra.mxu1 %v1504_v0  ;;  %1751 = vmatpush.bf16.msra.mxu3 %v1504_v0 }
  0x5b   : > { %p2025_p10 = pnand %p2024_p9, %p2020_p8 }
  0x5d   : > { %520 = vmatpush.bf16.msra.mxu0 %v1643_v7  ;;  %1746 = vmatpush.bf16.msra.mxu2 %v1643_v7  ;;  %v1487_v7 = vld [vmem:[#allocation7 + $0x10] sm:$0xf] }
  0x5e   : > { %709 = vmatpush.bf16.msra.mxu1 %v1496_v3  ;;  %1752 = vmatpush.bf16.msra.mxu3 %v1496_v3  ;;  %v1488_v9 = vor.u32 %v1654_v8, %v1487_v7 }
  0x60   : > { %521 = vmatmul.bf16.vlgmr.msra.gmra.mxu0 %v437_v10  ;;  %541 = vmatmul.bf16.vlgmr.msra.gmra.mxu2 %v441_v13  ;;  %v1651_v10 = vld [vmem:[#allocation7 + $0x4] sm:$0xf] }
  0x61   : > { %753 = vmatpush.bf16.msrb.mxu2 %v1540_v22  ;;  %v1484_v13 = vor.u32 %v1651_v10, %v1481_v11 }
  0x62   : > { %710 = vmatpush.bf16.msra.mxu1 %v1488_v9  ;;  %1753 = vmatpush.bf16.msra.mxu3 %v1488_v9 }
  0x65   : > { %754 = vmatpush.bf16.msrb.mxu2 %v1532_v25 }
  0x66   : > { %711 = vmatpush.bf16.msra.mxu1 %v1480_v15  ;;  %1754 = vmatpush.bf16.msra.mxu3 %v1480_v15 }
  0x69   : > { %755 = vmatpush.bf16.msrb.mxu2 %v1524_v35 }
  0x6d   : > { %756 = vmatpush.bf16.msrb.mxu2 %v1516_v48 }
  0x70   : > { %526 = vmatmul.bf16.gmra.mxu0 %v438_v16  ;;  %546 = vmatmul.bf16.gmra.mxu2 %v442_v19 }
  0x71   : > { %757 = vmatpush.bf16.msrb.mxu2 %v1508_v52 }
  0x75   : > { %758 = vmatpush.bf16.msrb.mxu2 %v1500_v55 }
  0x79   : > { %759 = vmatpush.bf16.msrb.mxu2 %v1492_v6  ;;  %v1674_v6 = vld [vmem:[#allocation8 + $0x38] sm:$0xff] }
  0x7a   : > { %1014 = vmatpush.bf16.msrb.mxu3 %v1674_v6 }
  0x7d   : > { %760 = vmatpush.bf16.msrb.mxu2 %v1484_v13 }
  0x80   : > { %531 = vmatmul.bf16.gmra.mxu0 %v439_v44  ;;  %551 = vmatmul.bf16.gmra.mxu2 %v443_v45 }
  0x90   : > { %536 = vmatmul.bf16.gmra.mxu0 %v440_v60  ;;  %556 = vmatmul.bf16.gmra.mxu2 %v444_v61 }
  0xdd   : > { %v522_v16 = vpop.f32.mrf.mxu0 }
  0xde   : > { %v523_v18 = vadd.f32 %v2294_v17, %v522_v16 }
  0xe0   : > { %v562_v21 = vmul.f32 0.2, %v523_v18 }
  0xe2   : > { %v578_v25 = vmax.f32 %v523_v18, %v562_v21 }
  0xe3   : > { %v542_v19 = vpop.f32.mrf.mxu2 }
  0xe4   : > { %v543_v23 = vadd.f32 %v2294_v17, %v542_v19 }
  0xe5   : > { %v524_v20 = vpop.f32.mrf.mxu0 }
  0xe6   : > { %v525_v22 = vadd.f32 %v2294_v17, %v524_v20  ;;  %v570_v27 = vmul.f32 0.2, %v543_v23 }
  0xe8   : > { %v563_v24 = vmul.f32 0.2, %v525_v22  ;;  %v586_v32 = vmax.f32 %v543_v23, %v570_v27 }
  0xea   : > { %v579_v26 = vmax.f32 %v525_v22, %v563_v24 }
  0xeb   : > { %v544_v28 = vpop.f32.mrf.mxu2 }
  0xec   : > { %v594_v29 = vpack.c.bf16 %v579_v26, %v578_v25  ;;  %v545_v30 = vadd.f32 %v2294_v17, %v544_v28  ;;  %v1673_v25 = vld [vmem:[#allocation8 + $0x30] sm:$0xff]  ;;  %v1682_v26 = vld [vmem:[#allocation8 + $0x78] sm:$0xff] }
  0xed   : > { %v527_v31 = vpop.f32.mrf.mxu0  ;;  %1015 = vmatpush.bf16.msrb.mxu3 %v1673_v25  ;;  %1063 = vmatpush.bf16.msrb.mxu0 %v1682_v26  ;;  %v1681_v28 = vld [vmem:[#allocation8 + $0x70] sm:$0xff] }
  0xee   : > { %712 = vmatmul.bf16.vlgmr.msra.gmra.mxu1 %v594_v29  ;;  %761 = vmatmul.bf16.vlgmr.msrb.gmra.mxu2 %v594_v29  ;;  %v571_v33 = vmul.f32 0.2, %v545_v30  ;;  %v528_v35 = vadd.f32 %v2294_v17, %v527_v31  ;;  %v1672_v29 = vld [vmem:[#allocation8 + $0x28] sm:$0xff]  ;;  %v1671_v31 = vld [vmem:[#allocation8 + $0x20] sm:$0xff] }
  0xf0   : > { %v587_v34 = vmax.f32 %v545_v30, %v571_v33  ;;  %v564_v39 = vmul.f32 0.2, %v528_v35  ;;  %v1679_v33 = vld [vmem:[#allocation8 + $0x60] sm:$0xff] }
  0xf1   : > { %1064 = vmatpush.bf16.msrb.mxu0 %v1681_v28  ;;  %1016 = vmatpush.bf16.msrb.mxu3 %v1672_v29 }
  0xf2   : > { %v2301_v36 = vpack.c.bf16 %v587_v34, %v586_v32  ;;  %v580_v43 = vmax.f32 %v528_v35, %v564_v39  ;;  %v1680_v32 = vld [vmem:[#allocation8 + $0x68] sm:$0xff]  ;;  %v1669_v34 = vld [vmem:[#allocation8 + $0x10] sm:$0xff]  ;;  %v1678_v35 = vld [vmem:[#allocation8 + $0x58] sm:$0xff] }
  0xf3   : > { %v547_v37 = vpop.f32.mrf.mxu2  ;;  %v1667_v39 = vld [vmem:[#allocation8] sm:$0xff] }
  0xf4   : > { %732 = vmatmul.bf16.vlgmr.msra.gmra.mxu3 %v2301_v36  ;;  %v548_v41 = vadd.f32 %v2294_v17, %v547_v37  ;;  %v1668_v37 = vld [vmem:[#allocation8 + $0x8] sm:$0xff] }
  0xf5   : > { %v529_v38 = vpop.f32.mrf.mxu0  ;;  %1017 = vmatpush.bf16.msrb.mxu3 %v1671_v31  ;;  %1065 = vmatpush.bf16.msrb.mxu0 %v1680_v32 }
  0xf6   : > { %v530_v40 = vadd.f32 %v2294_v17, %v529_v38  ;;  %v572_v45 = vmul.f32 0.2, %v548_v41  ;;  %v1677_v38 = vld [vmem:[#allocation8 + $0x50] sm:$0xff] }
  0xf8   : > { %v565_v42 = vmul.f32 0.2, %v530_v40  ;;  %v588_v50 = vmax.f32 %v548_v41, %v572_v45  ;;  %v618_v41 = vld [vmem:[%s2428_s4] sm:$0x3] }
  0xf9   : > { %1066 = vmatpush.bf16.msrb.mxu0 %v1679_v33 }
  0xfa   : > { %v581_v44 = vmax.f32 %v530_v40, %v565_v42  ;;  %v1675_v40 = vld [vmem:[#allocation8 + $0x40] sm:$0xff] }
  0xfb   : > { %v549_v46 = vpop.f32.mrf.mxu2 }
  0xfc   : > { %v595_v47 = vpack.c.bf16 %v581_v44, %v580_v43  ;;  %v550_v48 = vadd.f32 %v2294_v17, %v549_v46  ;;  %v2319_v43 = vperm.slane %v618_v41, 0  ;;  %v2322_v46 = vperm.slane %v618_v41, 1 }
  0xfd   : > { %v532_v49 = vpop.f32.mrf.mxu0  ;;  %1067 = vmatpush.bf16.msrb.mxu0 %v1678_v35 }
  0xfe   : > { %717 = vmatmul.bf16.gmra.mxu1 %v595_v47  ;;  %766 = vmatmul.bf16.gmra.mxu2 %v595_v47  ;;  %v573_v51 = vmul.f32 0.2, %v550_v48  ;;  %v533_v53 = vadd.f32 %v2294_v17, %v532_v49 }
 0x100   : > { %v589_v52 = vmax.f32 %v550_v48, %v573_v51  ;;  %v566_v57 = vmul.f32 0.2, %v533_v53 }
 0x101   : > { %1068 = vmatpush.bf16.msrb.mxu0 %v1677_v38 }
 0x102   : > { %v599_v54 = vpack.c.bf16 %v589_v52, %v588_v50  ;;  %v582_v61 = vmax.f32 %v533_v53, %v566_v57 }
 0x103   : > { %v552_v55 = vpop.f32.mrf.mxu2 }
 0x104   : > { %737 = vmatmul.bf16.gmra.mxu3 %v599_v54  ;;  %v553_v59 = vadd.f32 %v2294_v17, %v552_v55 }
 0x105   : > { %v534_v56 = vpop.f32.mrf.mxu0 }
 0x106   : > { %v535_v58 = vadd.f32 %v2294_v17, %v534_v56  ;;  %v574_v63 = vmul.f32 0.2, %v553_v59 }
 0x108   : > { %v567_v60 = vmul.f32 0.2, %v535_v58  ;;  %v590_v4 = vmax.f32 %v553_v59, %v574_v63 }
 0x10a   : > { %v583_v62 = vmax.f32 %v535_v58, %v567_v60 }
 0x10b   : > { %v554_v0 = vpop.f32.mrf.mxu2 }
 0x10c   : > { %v596_v1 = vpack.c.bf16 %v583_v62, %v582_v61  ;;  %v555_v2 = vadd.f32 %v2294_v17, %v554_v0 }
 0x10d   : > { %v537_v3 = vpop.f32.mrf.mxu0 }
 0x10e   : > { %722 = vmatmul.bf16.gmra.mxu1 %v596_v1  ;;  %771 = vmatmul.bf16.gmra.mxu2 %v596_v1  ;;  %v575_v5 = vmul.f32 0.2, %v555_v2  ;;  %v538_v8 = vadd.f32 %v2294_v17, %v537_v3 }
 0x110   : > { %v591_v7 = vmax.f32 %v555_v2, %v575_v5  ;;  %v568_v12 = vmul.f32 0.2, %v538_v8 }
 0x112   : > { %v600_v9 = vpack.c.bf16 %v591_v7, %v590_v4  ;;  %v584_v16 = vmax.f32 %v538_v8, %v568_v12 }
 0x113   : > { %v557_v10 = vpop.f32.mrf.mxu2 }
 0x114   : > { %742 = vmatmul.bf16.gmra.mxu3 %v600_v9  ;;  %v558_v14 = vadd.f32 %v2294_v17, %v557_v10 }
 0x115   : > { %v539_v11 = vpop.f32.mrf.mxu0 }
 0x116   : > { %v540_v13 = vadd.f32 %v2294_v17, %v539_v11  ;;  %v576_v19 = vmul.f32 0.2, %v558_v14 }
 0x118   : > { %v569_v15 = vmul.f32 0.2, %v540_v13  ;;  %v592_v23 = vmax.f32 %v558_v14, %v576_v19 }
 0x11a   : > { %v585_v18 = vmax.f32 %v540_v13, %v569_v15 }
 0x11b   : > { %v559_v20 = vpop.f32.mrf.mxu2 }
 0x11c   : > { %v597_v21 = vpack.c.bf16 %v585_v18, %v584_v16  ;;  %v560_v22 = vadd.f32 %v2294_v17, %v559_v20  ;;  %v1670_v17 = vld [vmem:[#allocation8 + $0x18] sm:$0xff] }
 0x11d   : > { %1018 = vmatpush.bf16.msrb.mxu3 %v1670_v17 }
 0x11e   : > { %727 = vmatmul.bf16.gmra.mxu1 %v597_v21  ;;  %776 = vmatmul.bf16.gmra.mxu2 %v597_v21  ;;  %v577_v24 = vmul.f32 0.2, %v560_v22 }
 0x120   : > { %v593_v27 = vmax.f32 %v560_v22, %v577_v24 }
 0x121   : > { %1019 = vmatpush.bf16.msrb.mxu3 %v1669_v34 }
 0x122   : > { %v601_v30 = vpack.c.bf16 %v593_v27, %v592_v23 }
 0x124   : > { %747 = vmatmul.bf16.gmra.mxu3 %v601_v30 }
 0x125   : > { %1020 = vmatpush.bf16.msrb.mxu3 %v1668_v37 }
 0x129   : > { %1021 = vmatpush.bf16.msrb.mxu3 %v1667_v39 }
 0x12e   : > { %781 = vmatmul.bf16.gmra.mxu2 %v2301_v36  ;;  %v1676_v36 = vld [vmem:[#allocation8 + $0x48] sm:$0xff] }
 0x12f   : > { %1069 = vmatpush.bf16.msrb.mxu0 %v1676_v36 }
 0x133   : > { %1070 = vmatpush.bf16.msrb.mxu0 %v1675_v40 }
 0x13e   : > { %786 = vmatmul.bf16.gmra.mxu2 %v599_v54 }
 0x14e   : > { %791 = vmatmul.bf16.gmra.mxu2 %v600_v9 }
 0x15e   : > { %796 = vmatmul.bf16.gmra.mxu2 %v601_v30 }
 0x16b   : > { %v713_v42 = vpop.f32.mrf.mxu1 }
 0x16c   : > { %v714_v44 = vadd.f32 %v713_v42, %v2319_v43 }
 0x16e   : > { %v802_v48 = vmul.f32 0.2, %v714_v44 }
 0x170   : > { %v834_v52 = vmax.f32 %v714_v44, %v802_v48 }
 0x171   : > { %v762_v45 = vpop.f32.mrf.mxu2 }
 0x172   : > { %v763_v50 = vadd.f32 %v762_v45, %v2322_v46 }
 0x173   : > { %v715_v47 = vpop.f32.mrf.mxu1 }
 0x174   : > { %v716_v49 = vadd.f32 %v715_v47, %v2319_v43  ;;  %v803_v55 = vmul.f32 0.2, %v763_v50 }
 0x176   : > { %v804_v51 = vmul.f32 0.2, %v716_v49  ;;  %v835_v60 = vmax.f32 %v763_v50, %v803_v55 }
 0x177   : > { %v733_v23 = vpop.f32.mrf.mxu3 }
 0x178   : > { %v836_v53 = vmax.f32 %v716_v49, %v804_v51 }
 0x179   : > { %v764_v54 = vpop.f32.mrf.mxu2 }
 0x17a   : > { %v765_v56 = vadd.f32 %v764_v54, %v2322_v46  ;;  %v866_v57 = vpack.c.bf16 %v836_v53, %v834_v52  ;;  %v734_v54 = vadd.f32 %v733_v23, %v2319_v43 }
 0x17b   : > { %v718_v58 = vpop.f32.mrf.mxu1 }
 0x17c   : > { %v805_v59 = vmul.f32 0.2, %v765_v56  ;;  %1022 = vmatmul.bf16.vlgmr.msrb.gmra.mxu3 %v866_v57  ;;  %v719_v62 = vadd.f32 %v718_v58, %v2319_v43 }
 0x17e   : > { %v837_v61 = vmax.f32 %v765_v56, %v805_v59  ;;  %v806_v2 = vmul.f32 0.2, %v719_v62 }
 0x17f   : > { %v735_v35 = vpop.f32.mrf.mxu3 }
 0x180   : > { %v867_v63 = vpack.c.bf16 %v837_v61, %v835_v60  ;;  %v838_v6 = vmax.f32 %v719_v62, %v806_v2  ;;  %v736_v55 = vadd.f32 %v735_v35, %v2319_v43  ;;  %v818_v60 = vmul.f32 0.2, %v734_v54  ;;  %v1690_v2 = vld [vmem:[#allocation10 + $0x38] sm:$0xff] }
 0x181   : > { %v767_v0 = vpop.f32.mrf.mxu2  ;;  %1220 = vmatpush.bf16.msrb.mxu1 %v1690_v2 }
 0x182   : > { %1071 = vmatmul.bf16.vlgmr.msrb.gmra.mxu0 %v867_v63  ;;  %v768_v4 = vadd.f32 %v767_v0, %v2322_v46  ;;  %v820_v61 = vmul.f32 0.2, %v736_v55  ;;  %v850_v63 = vmax.f32 %v734_v54, %v818_v60 }
 0x183   : > { %v720_v1 = vpop.f32.mrf.mxu1 }
 0x184   : > { %v721_v3 = vadd.f32 %v720_v1, %v2319_v43  ;;  %v807_v9 = vmul.f32 0.2, %v768_v4  ;;  %v852_v0 = vmax.f32 %v736_v55, %v820_v61 }
 0x186   : > { %v808_v5 = vmul.f32 0.2, %v721_v3  ;;  %v839_v14 = vmax.f32 %v768_v4, %v807_v9 }
 0x187   : > { %v738_v48 = vpop.f32.mrf.mxu3 }
 0x188   : > { %v840_v7 = vmax.f32 %v721_v3, %v808_v5  ;;  %v739_v9 = vadd.f32 %v738_v48, %v2319_v43 }
 0x189   : > { %v769_v8 = vpop.f32.mrf.mxu2 }
 0x18a   : > { %v770_v10 = vadd.f32 %v769_v8, %v2322_v46  ;;  %v868_v11 = vpack.c.bf16 %v840_v7, %v838_v6  ;;  %v874_v6 = vpack.c.bf16 %v852_v0, %v850_v63 }
 0x18b   : > { %v723_v12 = vpop.f32.mrf.mxu1 }
 0x18c   : > { %v809_v13 = vmul.f32 0.2, %v770_v10  ;;  %1027 = vmatmul.bf16.gmra.mxu3 %v868_v11  ;;  %v724_v16 = vadd.f32 %v723_v12, %v2319_v43 }
 0x18e   : > { %v841_v15 = vmax.f32 %v770_v10, %v809_v13  ;;  %v810_v21 = vmul.f32 0.2, %v724_v16  ;;  %v1689_v13 = vld [vmem:[#allocation10 + $0x30] sm:$0xff] }
 0x18f   : > { %v740_v62 = vpop.f32.mrf.mxu3  ;;  %1221 = vmatpush.bf16.msrb.mxu1 %v1689_v13 }
 0x190   : > { %v869_v18 = vpack.c.bf16 %v841_v15, %v839_v14  ;;  %v842_v26 = vmax.f32 %v724_v16, %v810_v21  ;;  %v741_v10 = vadd.f32 %v740_v62, %v2319_v43  ;;  %v822_v16 = vmul.f32 0.2, %v739_v9  ;;  %v1684_v62 = vld [vmem:[#allocation10 + $0x8] sm:$0xff] }
 0x191   : > { %v772_v19 = vpop.f32.mrf.mxu2 }
 0x192   : > { %1076 = vmatmul.bf16.gmra.mxu0 %v869_v18  ;;  %v773_v24 = vadd.f32 %v772_v19, %v2322_v46  ;;  %v824_v18 = vmul.f32 0.2, %v741_v10  ;;  %v854_v19 = vmax.f32 %v739_v9, %v822_v16 }
 0x193   : > { %v725_v20 = vpop.f32.mrf.mxu1 }
 0x194   : > { %v726_v22 = vadd.f32 %v725_v20, %v2319_v43  ;;  %v811_v29 = vmul.f32 0.2, %v773_v24  ;;  %v856_v20 = vmax.f32 %v741_v10, %v824_v18 }
 0x196   : > { %v812_v25 = vmul.f32 0.2, %v726_v22  ;;  %v843_v33 = vmax.f32 %v773_v24, %v811_v29 }
 0x197   : > { %v743_v8 = vpop.f32.mrf.mxu3 }
 0x198   : > { %v844_v27 = vmax.f32 %v726_v22, %v812_v25  ;;  %v1688_v22 = vld [vmem:[#allocation10 + $0x28] sm:$0xff]  ;;  %v744_v29 = vadd.f32 %v743_v8, %v2319_v43 }
 0x199   : > { %v774_v28 = vpop.f32.mrf.mxu2  ;;  %1222 = vmatpush.bf16.msrb.mxu1 %v1688_v22 }
 0x19a   : > { %v775_v30 = vadd.f32 %v774_v28, %v2322_v46  ;;  %v870_v31 = vpack.c.bf16 %v844_v27, %v842_v26  ;;  %v876_v27 = vpack.c.bf16 %v856_v20, %v854_v19 }
 0x19b   : > { %v728_v32 = vpop.f32.mrf.mxu1 }
 0x19c   : > { %v813_v17 = vmul.f32 0.2, %v775_v30  ;;  %1032 = vmatmul.bf16.gmra.mxu3 %v870_v31  ;;  %v729_v37 = vadd.f32 %v728_v32, %v2319_v43 }
 0x19e   : > { %v845_v34 = vmax.f32 %v775_v30, %v813_v17  ;;  %v814_v40 = vmul.f32 0.2, %v729_v37  ;;  %v1687_v17 = vld [vmem:[#allocation10 + $0x20] sm:$0xff] }
 0x19f   : > { %v745_v23 = vpop.f32.mrf.mxu3  ;;  %1223 = vmatpush.bf16.msrb.mxu1 %v1687_v17 }
 0x1a0   : > { %v871_v38 = vpack.c.bf16 %v845_v34, %v843_v33  ;;  %v846_v45 = vmax.f32 %v729_v37, %v814_v40  ;;  %v746_v30 = vadd.f32 %v745_v23, %v2319_v43  ;;  %v826_v37 = vmul.f32 0.2, %v744_v29 }
 0x1a1   : > { %v777_v39 = vpop.f32.mrf.mxu2 }
 0x1a2   : > { %1081 = vmatmul.bf16.gmra.mxu0 %v871_v38  ;;  %v778_v42 = vadd.f32 %v777_v39, %v2322_v46  ;;  %v828_v38 = vmul.f32 0.2, %v746_v30  ;;  %v1686_v39 = vld [vmem:[#allocation10 + $0x18] sm:$0xff]  ;;  %v858_v40 = vmax.f32 %v744_v29, %v826_v37 }
 0x1a3   : > { %v730_v36 = vpop.f32.mrf.mxu1  ;;  %1224 = vmatpush.bf16.msrb.mxu1 %v1686_v39 }
 0x1a4   : > { %v731_v41 = vadd.f32 %v730_v36, %v2319_v43  ;;  %v815_v50 = vmul.f32 0.2, %v778_v42  ;;  %v1685_v36 = vld [vmem:[#allocation10 + $0x10] sm:$0xff] }
 0x1a6   : > { %v816_v44 = vmul.f32 0.2, %v731_v41  ;;  %v847_v56 = vmax.f32 %v778_v42, %v815_v50 }
 0x1a7   : > { %v748_v34 = vpop.f32.mrf.mxu3  ;;  %1225 = vmatpush.bf16.msrb.mxu1 %v1685_v36 }
 0x1a8   : > { %v848_v47 = vmax.f32 %v731_v41, %v816_v44  ;;  %v860_v41 = vmax.f32 %v746_v30, %v828_v38 }
 0x1a9   : > { %v779_v49 = vpop.f32.mrf.mxu2 }
 0x1aa   : > { %v780_v51 = vadd.f32 %v779_v49, %v2322_v46  ;;  %v872_v52 = vpack.c.bf16 %v848_v47, %v846_v45  ;;  %v878_v48 = vpack.c.bf16 %v860_v41, %v858_v40 }
 0x1ab   : > { %1226 = vmatpush.bf16.msrb.mxu1 %v1684_v62 }
 0x1ac   : > { %v817_v53 = vmul.f32 0.2, %v780_v51  ;;  %1037 = vmatmul.bf16.gmra.mxu3 %v872_v52 }
 0x1ae   : > { %v849_v57 = vmax.f32 %v780_v51, %v817_v53  ;;  %v749_v51 = vadd.f32 %v748_v34, %v2319_v43 }
 0x1af   : > { %v750_v49 = vpop.f32.mrf.mxu3 }
 0x1b0   : > { %v873_v58 = vpack.c.bf16 %v849_v57, %v847_v56  ;;  %v751_v52 = vadd.f32 %v750_v49, %v2319_v43  ;;  %v830_v57 = vmul.f32 0.2, %v749_v51  ;;  %v1683_v43 = vld [vmem:[#allocation10] sm:$0xff] }
 0x1b1   : > { %v782_v59 = vpop.f32.mrf.mxu2  ;;  %1227 = vmatpush.bf16.msrb.mxu1 %v1683_v43 }
 0x1b2   : > { %1086 = vmatmul.bf16.gmra.mxu0 %v873_v58  ;;  %v783_v1 = vadd.f32 %v782_v59, %v2322_v46  ;;  %v832_v58 = vmul.f32 0.2, %v751_v52  ;;  %v862_v59 = vmax.f32 %v749_v51, %v830_v57 }
 0x1b4   : > { %v819_v4 = vmul.f32 0.2, %v783_v1  ;;  %v864_v60 = vmax.f32 %v751_v52, %v832_v58 }
 0x1b6   : > { %v851_v11 = vmax.f32 %v783_v1, %v819_v4  ;;  %v880_v2 = vpack.c.bf16 %v864_v60, %v862_v59 }
 0x1b9   : > { %v784_v3 = vpop.f32.mrf.mxu2 }
 0x1ba   : > { %v785_v5 = vadd.f32 %v784_v3, %v2322_v46 }
 0x1bc   : > { %v821_v7 = vmul.f32 0.2, %v785_v5  ;;  %1042 = vmatmul.bf16.gmra.mxu3 %v874_v6 }
 0x1be   : > { %v853_v12 = vmax.f32 %v785_v5, %v821_v7  ;;  %v2358_v7 = vld [vmem:[%s2430_s6] ss:$0 sm:$0xff] }
 0x1c0   : > { %v875_v14 = vpack.c.bf16 %v853_v12, %v851_v11 }
 0x1c1   : > { %v787_v15 = vpop.f32.mrf.mxu2 }
 0x1c2   : > { %1091 = vmatmul.bf16.gmra.mxu0 %v875_v14  ;;  %v788_v21 = vadd.f32 %v787_v15, %v2322_v46 }
 0x1c4   : > { %v823_v25 = vmul.f32 0.2, %v788_v21 }
 0x1c6   : > { %v855_v31 = vmax.f32 %v788_v21, %v823_v25 }
 0x1c9   : > { %v789_v24 = vpop.f32.mrf.mxu2 }
 0x1ca   : > { %v790_v26 = vadd.f32 %v789_v24, %v2322_v46 }
 0x1cc   : > { %v825_v28 = vmul.f32 0.2, %v790_v26  ;;  %1047 = vmatmul.bf16.gmra.mxu3 %v876_v27 }
 0x1ce   : > { %v857_v32 = vmax.f32 %v790_v26, %v825_v28 }
 0x1d0   : > { %v877_v33 = vpack.c.bf16 %v857_v32, %v855_v31 }
 0x1d1   : > { %v792_v35 = vpop.f32.mrf.mxu2 }
 0x1d2   : > { %1096 = vmatmul.bf16.gmra.mxu0 %v877_v33  ;;  %v793_v42 = vadd.f32 %v792_v35, %v2322_v46 }
 0x1d4   : > { %v827_v45 = vmul.f32 0.2, %v793_v42 }
 0x1d6   : > { %v859_v53 = vmax.f32 %v793_v42, %v827_v45 }
 0x1d9   : > { %v794_v44 = vpop.f32.mrf.mxu2 }
 0x1da   : > { %v795_v47 = vadd.f32 %v794_v44, %v2322_v46 }
 0x1dc   : > { %v829_v50 = vmul.f32 0.2, %v795_v47  ;;  %1052 = vmatmul.bf16.gmra.mxu3 %v878_v48 }
 0x1de   : > { %v861_v54 = vmax.f32 %v795_v47, %v829_v50 }
 0x1e0   : > { %v879_v55 = vpack.c.bf16 %v861_v54, %v859_v53 }
 0x1e1   : > { %v797_v56 = vpop.f32.mrf.mxu2 }
 0x1e2   : > { %1101 = vmatmul.bf16.gmra.mxu0 %v879_v55  ;;  %v798_v61 = vadd.f32 %v797_v56, %v2322_v46 }
 0x1e4   : > { %v831_v0 = vmul.f32 0.2, %v798_v61 }
 0x1e6   : > { %v863_v4 = vmax.f32 %v798_v61, %v831_v0 }
 0x1e9   : > { %v799_v63 = vpop.f32.mrf.mxu2 }
 0x1ea   : > { %v800_v1 = vadd.f32 %v799_v63, %v2322_v46 }
 0x1ec   : > { %v833_v3 = vmul.f32 0.2, %v800_v1  ;;  %1057 = vmatmul.bf16.gmra.mxu3 %v880_v2 }
 0x1ee   : > { %v865_v5 = vmax.f32 %v800_v1, %v833_v3 }
 0x1f0   : > { %v881_v6 = vpack.c.bf16 %v865_v5, %v863_v4 }
 0x1f2   : > { %1106 = vmatmul.bf16.gmra.mxu0 %v881_v6 }
 0x1ff   : > { %v1023_v8 = vpop.f32.mrf.mxu3  ;;  %v1072_v9 = vpop.f32.mrf.mxu0 }
 0x200   : > { %v1024_v10 = vadd.f32 %v2358_v7, %v1023_v8 }
 0x202   : > { %v1073_v11 = vadd.f32 %v1072_v9, %v1024_v10 }
 0x204   : > { %v1112_v14 = vmul.f32 0.2, %v1073_v11 }
 0x206   : > { %v1128_v18 = vmax.f32 %v1073_v11, %v1112_v14 }
 0x207   : > { %v1025_v46 = vpop.f32.mrf.mxu3  ;;  %v1074_v12 = vpop.f32.mrf.mxu0 }
 0x208   : > { %v1026_v13 = vadd.f32 %v2358_v7, %v1025_v46 }
 0x20a   : > { %v1075_v15 = vadd.f32 %v1074_v12, %v1026_v13 }
 0x20c   : > { %v1113_v16 = vmul.f32 0.2, %v1075_v15 }
 0x20e   : > { %v1129_v19 = vmax.f32 %v1075_v15, %v1113_v16 }
 0x20f   : > { %v1028_v20 = vpop.f32.mrf.mxu3  ;;  %v1077_v21 = vpop.f32.mrf.mxu0 }
 0x210   : > { %v1144_v22 = vpack.c.bf16 %v1129_v19, %v1128_v18  ;;  %v1029_v23 = vadd.f32 %v2358_v7, %v1028_v20 }
 0x212   : > { %1228 = vmatmul.bf16.vlgmr.msrb.gmra.mxu1 %v1144_v22  ;;  %v1078_v24 = vadd.f32 %v1077_v21, %v1029_v23 }
 0x214   : > { %v1114_v28 = vmul.f32 0.2, %v1078_v24 }
 0x216   : > { %v1130_v31 = vmax.f32 %v1078_v24, %v1114_v28 }
 0x217   : > { %v1030_v25 = vpop.f32.mrf.mxu3  ;;  %v1079_v26 = vpop.f32.mrf.mxu0 }
 0x218   : > { %v1031_v27 = vadd.f32 %v2358_v7, %v1030_v25 }
 0x21a   : > { %v1080_v29 = vadd.f32 %v1079_v26, %v1031_v27 }
 0x21c   : > { %v1115_v30 = vmul.f32 0.2, %v1080_v29 }
 0x21e   : > { %v1131_v32 = vmax.f32 %v1080_v29, %v1115_v30 }
 0x21f   : > { %v1033_v17 = vpop.f32.mrf.mxu3  ;;  %v1082_v33 = vpop.f32.mrf.mxu0 }
 0x220   : > { %v1145_v34 = vpack.c.bf16 %v1131_v32, %v1130_v31  ;;  %v1034_v35 = vadd.f32 %v2358_v7, %v1033_v17 }
 0x222   : > { %1233 = vmatmul.bf16.gmra.mxu1 %v1145_v34  ;;  %v1083_v37 = vadd.f32 %v1082_v33, %v1034_v35 }
 0x224   : > { %v1116_v40 = vmul.f32 0.2, %v1083_v37 }
 0x226   : > { %v1132_v44 = vmax.f32 %v1083_v37, %v1116_v40 }
 0x227   : > { %v1035_v38 = vpop.f32.mrf.mxu3  ;;  %v1084_v39 = vpop.f32.mrf.mxu0 }
 0x228   : > { %v1036_v36 = vadd.f32 %v2358_v7, %v1035_v38 }
 0x22a   : > { %v1085_v41 = vadd.f32 %v1084_v39, %v1036_v36 }
 0x22c   : > { %v1117_v42 = vmul.f32 0.2, %v1085_v41 }
 0x22e   : > { %v1133_v45 = vmax.f32 %v1085_v41, %v1117_v42 }
 0x22f   : > { %v1038_v47 = vpop.f32.mrf.mxu3  ;;  %v1087_v48 = vpop.f32.mrf.mxu0 }
 0x230   : > { %v1146_v49 = vpack.c.bf16 %v1133_v45, %v1132_v44  ;;  %v1039_v50 = vadd.f32 %v2358_v7, %v1038_v47 }
 0x232   : > { %1238 = vmatmul.bf16.gmra.mxu1 %v1146_v49  ;;  %v1088_v51 = vadd.f32 %v1087_v48, %v1039_v50 }
 0x234   : > { %v1118_v55 = vmul.f32 0.2, %v1088_v51 }
 0x236   : > { %v1134_v58 = vmax.f32 %v1088_v51, %v1118_v55  ;;  %v1850_v51 = vld [vmem:[%s2432_s8] ss:$0 sm:$0xff] }
 0x237   : > { %v1040_v52 = vpop.f32.mrf.mxu3  ;;  %v1089_v53 = vpop.f32.mrf.mxu0 }
 0x238   : > { %v1041_v54 = vadd.f32 %v2358_v7, %v1040_v52 }
 0x23a   : > { %v1090_v56 = vadd.f32 %v1089_v53, %v1041_v54 }
 0x23c   : > { %v1119_v57 = vmul.f32 0.2, %v1090_v56 }
 0x23e   : > { %v1135_v59 = vmax.f32 %v1090_v56, %v1119_v57 }
 0x23f   : > { %v1043_v60 = vpop.f32.mrf.mxu3  ;;  %v1092_v61 = vpop.f32.mrf.mxu0 }
 0x240   : > { %v1147_v62 = vpack.c.bf16 %v1135_v59, %v1134_v58  ;;  %v1044_v63 = vadd.f32 %v2358_v7, %v1043_v60 }
 0x242   : > { %1243 = vmatmul.bf16.gmra.mxu1 %v1147_v62  ;;  %v1093_v0 = vadd.f32 %v1092_v61, %v1044_v63 }
 0x244   : > { %v1120_v43 = vmul.f32 0.2, %v1093_v0 }
 0x246   : > { %v1136_v6 = vmax.f32 %v1093_v0, %v1120_v43 }
 0x247   : > { %v1045_v1 = vpop.f32.mrf.mxu3  ;;  %v1094_v2 = vpop.f32.mrf.mxu0 }
 0x248   : > { %v1046_v3 = vadd.f32 %v2358_v7, %v1045_v1 }
 0x24a   : > { %v1095_v4 = vadd.f32 %v1094_v2, %v1046_v3 }
 0x24c   : > { %v1121_v5 = vmul.f32 0.2, %v1095_v4 }
 0x24e   : > { %v1137_v8 = vmax.f32 %v1095_v4, %v1121_v5 }
 0x24f   : > { %v1048_v9 = vpop.f32.mrf.mxu3  ;;  %v1097_v10 = vpop.f32.mrf.mxu0 }
 0x250   : > { %v1148_v11 = vpack.c.bf16 %v1137_v8, %v1136_v6  ;;  %v1049_v46 = vadd.f32 %v2358_v7, %v1048_v9 }
 0x252   : > { %1248 = vmatmul.bf16.gmra.mxu1 %v1148_v11  ;;  %v1098_v12 = vadd.f32 %v1097_v10, %v1049_v46 }
 0x254   : > { %v1122_v16 = vmul.f32 0.2, %v1098_v12 }
 0x256   : > { %v1138_v20 = vmax.f32 %v1098_v12, %v1122_v16 }
 0x257   : > { %v1050_v13 = vpop.f32.mrf.mxu3  ;;  %v1099_v14 = vpop.f32.mrf.mxu0 }
 0x258   : > { %v1051_v15 = vadd.f32 %v2358_v7, %v1050_v13 }
 0x25a   : > { %v1100_v18 = vadd.f32 %v1099_v14, %v1051_v15 }
 0x25c   : > { %v1123_v19 = vmul.f32 0.2, %v1100_v18 }
 0x25e   : > { %v1139_v21 = vmax.f32 %v1100_v18, %v1123_v19 }
 0x25f   : > { %v1053_v22 = vpop.f32.mrf.mxu3  ;;  %v1102_v23 = vpop.f32.mrf.mxu0 }
 0x260   : > { %v1149_v24 = vpack.c.bf16 %v1139_v21, %v1138_v20  ;;  %v1054_v25 = vadd.f32 %v2358_v7, %v1053_v22 }
 0x262   : > { %1253 = vmatmul.bf16.gmra.mxu1 %v1149_v24  ;;  %v1103_v26 = vadd.f32 %v1102_v23, %v1054_v25 }
 0x264   : > { %v1124_v30 = vmul.f32 0.2, %v1103_v26 }
 0x266   : > { %v1140_v17 = vmax.f32 %v1103_v26, %v1124_v30 }
 0x267   : > { %v1055_v27 = vpop.f32.mrf.mxu3  ;;  %v1104_v28 = vpop.f32.mrf.mxu0 }
 0x268   : > { %v1056_v29 = vadd.f32 %v2358_v7, %v1055_v27 }
 0x26a   : > { %v1105_v31 = vadd.f32 %v1104_v28, %v1056_v29 }
 0x26c   : > { %v1125_v32 = vmul.f32 0.2, %v1105_v31 }
 0x26e   : > { %v1141_v33 = vmax.f32 %v1105_v31, %v1125_v32 }
 0x26f   : > { %v1058_v34 = vpop.f32.mrf.mxu3  ;;  %v1107_v35 = vpop.f32.mrf.mxu0 }
 0x270   : > { %v1150_v37 = vpack.c.bf16 %v1141_v33, %v1140_v17  ;;  %v1059_v38 = vadd.f32 %v2358_v7, %v1058_v34 }
 0x272   : > { %1258 = vmatmul.bf16.gmra.mxu1 %v1150_v37  ;;  %v1108_v39 = vadd.f32 %v1107_v35, %v1059_v38 }
 0x274   : > { %v1126_v42 = vmul.f32 0.2, %v1108_v39 }
 0x276   : > { %v1142_v47 = vmax.f32 %v1108_v39, %v1126_v42 }
 0x277   : > { %v1060_v36 = vpop.f32.mrf.mxu3  ;;  %v1109_v41 = vpop.f32.mrf.mxu0 }
 0x278   : > { %v1061_v40 = vadd.f32 %v2358_v7, %v1060_v36 }
 0x27a   : > { %v1110_v44 = vadd.f32 %v1109_v41, %v1061_v40 }
 0x27c   : > { %v1127_v45 = vmul.f32 0.2, %v1110_v44 }
 0x27e   : > { %v1143_v48 = vmax.f32 %v1110_v44, %v1127_v45 }
 0x280   : > { %v1151_v49 = vpack.c.bf16 %v1143_v48, %v1142_v47 }
 0x282   : > { %1263 = vmatmul.bf16.gmra.mxu1 %v1151_v49 }
 0x28f   : > { %v1229_v50 = vpop.f32.mrf.mxu1 }
 0x290   : > { %v1230_v53 = vadd.f32 %v1850_v51, %v1229_v50 }
 0x297   : > { %v1231_v52 = vpop.f32.mrf.mxu1 }
 0x298   : > { %v1232_v54 = vadd.f32 %v1850_v51, %v1231_v52 }
 0x29a   : > { %v1695_v55 = vpack.c.bf16 %v1232_v54, %v1230_v53 }
 0x29c   : > { %1696 = vst [vmem:[%s2380_s25] sm:$0xff] %v1695_v55  }
 0x29f   : > { %v1234_v7 = vpop.f32.mrf.mxu1 }
 0x2a0   : > { %v1235_v57 = vadd.f32 %v1850_v51, %v1234_v7 }
 0x2a7   : > { %v1236_v56 = vpop.f32.mrf.mxu1 }
 0x2a8   : > { %v1237_v58 = vadd.f32 %v1850_v51, %v1236_v56 }
 0x2aa   : > { %v1700_v59 = vpack.c.bf16 %v1237_v58, %v1235_v57 }
 0x2ac   : > { %1732 = vst [vmem:[%s2380_s25 + $0x8] sm:$0xff] %v1700_v59  }
 0x2af   : > { %v1239_v60 = vpop.f32.mrf.mxu1 }
 0x2b0   : > { %v1240_v62 = vadd.f32 %v1850_v51, %v1239_v60 }
 0x2b7   : > { %v1241_v61 = vpop.f32.mrf.mxu1 }
 0x2b8   : > { %v1242_v63 = vadd.f32 %v1850_v51, %v1241_v61 }
 0x2ba   : > { %v1705_v0 = vpack.c.bf16 %v1242_v63, %v1240_v62 }
 0x2bc   : > { %1733 = vst [vmem:[%s2380_s25 + $0x10] sm:$0xff] %v1705_v0  }
 0x2bf   : > { %v1244_v1 = vpop.f32.mrf.mxu1 }
 0x2c0   : > { %v1245_v3 = vadd.f32 %v1850_v51, %v1244_v1 }
 0x2c7   : > { %v1246_v2 = vpop.f32.mrf.mxu1 }
 0x2c8   : > { %v1247_v43 = vadd.f32 %v1850_v51, %v1246_v2 }
 0x2ca   : > { %v1710_v4 = vpack.c.bf16 %v1247_v43, %v1245_v3 }
 0x2cc   : > { %1734 = vst [vmem:[%s2380_s25 + $0x18] sm:$0xff] %v1710_v4  }
 0x2cf   : > { %v1249_v5 = vpop.f32.mrf.mxu1 }
 0x2d0   : > { %v1250_v8 = vadd.f32 %v1850_v51, %v1249_v5 }
 0x2d7   : > { %v1251_v6 = vpop.f32.mrf.mxu1 }
 0x2d8   : > { %v1252_v9 = vadd.f32 %v1850_v51, %v1251_v6 }
 0x2da   : > { %v1715_v10 = vpack.c.bf16 %v1252_v9, %v1250_v8 }
 0x2dc   : > { %1735 = vst [vmem:[%s2380_s25 + $0x20] sm:$0xff] %v1715_v10  }
 0x2df   : > { %v1254_v11 = vpop.f32.mrf.mxu1 }
 0x2e0   : > { %v1255_v12 = vadd.f32 %v1850_v51, %v1254_v11 }
 0x2e7   : > { %v1256_v46 = vpop.f32.mrf.mxu1 }
 0x2e8   : > { %v1257_v13 = vadd.f32 %v1850_v51, %v1256_v46 }
 0x2ea   : > { %v1720_v14 = vpack.c.bf16 %v1257_v13, %v1255_v12 }
 0x2ec   : > { %1736 = vst [vmem:[%s2380_s25 + $0x28] sm:$0xff] %v1720_v14  }
 0x2ef   : > { %v1259_v15 = vpop.f32.mrf.mxu1 }
 0x2f0   : > { %v1260_v18 = vadd.f32 %v1850_v51, %v1259_v15 }
 0x2f7   : > { %v1261_v16 = vpop.f32.mrf.mxu1 }
 0x2f8   : > { %v1262_v19 = vadd.f32 %v1850_v51, %v1261_v16 }
 0x2fa   : > { %v1725_v20 = vpack.c.bf16 %v1262_v19, %v1260_v18 }
 0x2fc   : > { %1737 = vst [vmem:[%s2380_s25 + $0x30] sm:$0xff] %v1725_v20  }
 0x2ff   : > { %v1264_v21 = vpop.f32.mrf.mxu1 }
 0x300   : > { %v1265_v23 = vadd.f32 %v1850_v51, %v1264_v21 }
 0x307   : > { %v1266_v22 = vpop.f32.mrf.mxu1 }
 0x308   : > { %v1267_v24 = vadd.f32 %v1850_v51, %v1266_v22 }
 0x30a   : > { %v1730_v25 = vpack.c.bf16 %v1267_v24, %v1265_v23 }
 0x30c   : > { %1738 = vst [vmem:[%s2380_s25 + $0x38] sm:$0xff] %v1730_v25  }
 0x30d   : > { %2028 = shalt.err (!%p2025_p10)
}
 0x30e   : > { %s2085_s27 = smov 64   ;;  %s2086_s25 = smov 4  }
 0x30f   : > { %1773 = dma.vmem_to_hbm [thread:$0]  (%p2224_p3), %s1315_s15, 1024, %s1317_s20, %s1302_s17, %s2085_s27, %s2085_s27, %s2086_s25  }
 0x310 PF: > { %s1331_s14 = sand.u32 1, %s2063_s30   ;;  %p2450_p12 = scmp.ge.s32.totalorder %s2075_s12, 2 }
 0x311   : > { %s1332_s3 = scalar_lea.sflag [#allocation4], %s1331_s14 }
 0x312   : > { %p1793_p13 = pnand %p2450_p12, %p2172_p6 }
 0x314   : > { %p1794_p0 = pneg %p1793_p13 }
 0x316   : > { %2058 = dma.done.wait (%p1794_p0), %s1332_s3, 1024  }
 0x317   : > { %2060 = vsyncadd (%p1794_p0), %s1332_s3, 4294966272  ;;  %p24_p5 = scmp.ge.s32.totalorder %s2214_s24, 4   ;;  %s2451_s30 = smov %s2067_s10 }
 0x318   : > { %s2452_s10 = smov %s2071_s11  ;;  %s2453_s11 = smov %s2230_s21 }
 0x319   : > { %s2454_s12 = smov %s2214_s24  ;;  %26 = sbr.rel (!%p24_p5) target bundleno = 11 (0xb), region = 117 }
 0x31e   :  { %1338 = vsyncpa [#allocation3], 1 }
 0x31f   :  { %1340 = vsyncpa [#allocation3 + $0x1], 1 }
 0x320   :  { %1341 = vsyncpa [#allocation6], 1 }
 0x321   :  { %1342 = vsyncpa [#allocation9], 1 }
 0x322   :  { %1343 = vsyncpa [#allocation4], 1 }
 0x323   :  { %1345 = vsyncpa [#allocation4 + $0x1], 1 }

</bundles_post_ra>
